<compile_context>
chip_gen: v7x
topology: tpu7x:2x2x1
jax: 0.10.0
libtpu: 0.0.40
codegen_flags: <defaults>
</compile_context>

<pallas_src>
import jax
import jax.numpy as jnp
from jax.experimental import pallas as pl
from jax.experimental.pallas import tpu as pltpu


def _upscale_kernel(x_ref, alpha_ref, w_ref, o_ref):
    """Fused Snake1d + per-tap ConvTranspose1d channel matmul for one row tile."""
    x = x_ref[...]                                   # (TR, Cinp) f32
    alpha = alpha_ref[...]                           # (1, Cinp)  f32, broadcast over rows
    inv_alpha = pl.reciprocal(alpha + 1e-9, approx=True)   # EUP slot -> effectively free
    # Snake: y = x + 1/(alpha + 1e-9) * sin(alpha * x)^2   (VPU math in f32)
    gate = jnp.sin(alpha * x)
    act = x + inv_alpha * (gate * gate)
    # All conv-transpose taps at once on the MXU: bf16 in, f32 accumulate,
    # bf16 writeback (taps are re-accumulated in f32 in the epilogue).
    o_ref[...] = jnp.dot(
        act.astype(jnp.bfloat16), w_ref[...],
        preferred_element_type=jnp.float32,
    ).astype(o_ref.dtype)


def _round_up(x, m):
    return ((x + m - 1) // m) * m


def _vmem_limit_and_row_tile(R, Cinp, KCp, row_tile):
    """Generation-aware VMEM budget and row-tile size."""
    try:
        info = pltpu.get_tpu_info()
        cap = int(getattr(info, "vmem_capacity_bytes", 0)) or 64 * 1024 * 1024
    except Exception:
        cap = 64 * 1024 * 1024                        # conservative (v7x-sized)
    # Leave headroom below physical VMEM: ~48 MiB on v7x (64 MiB physical),
    # ~100 MiB on v5e/v6e (128 MiB physical).
    vmem_limit = max(32 * 1024 * 1024,
                     min(cap - 16 * 1024 * 1024, 100 * 1024 * 1024))
    # Budget: weight (worst case 2x if single-buffering falls back) + alpha,
    # double-buffered f32 input tile, double-buffered bf16 output tile.
    resident = 2 * Cinp * KCp * 2 + 2 * Cinp * 4
    per_row = 2 * Cinp * 4 + 2 * KCp * 2
    avail = vmem_limit - resident - 2 * 1024 * 1024
    if row_tile is None:
        tr = avail // per_row if avail > 0 else 16
        tr = min(tr, 2048)
    else:
        tr = row_tile
    tr = max(16, (int(tr) // 16) * 16)                # bf16 packing: 16-row multiple
    tr = min(tr, _round_up(R, 16))
    return int(vmem_limit), int(tr)


def upscale_forward(x, alpha, weight, bias, stride, output_shape=None, row_tile=None):
    """Forward pass matching torch UpScale.

    x      : (B, T, Cin)    float32
    alpha  : (Cin,)         Snake1d parameter (torch shape (Cin, 1) squeezed)
    weight : (Cin, Cout, K) torch ConvTranspose1d weight layout
    bias   : (Cout,)        ConvTranspose1d bias
    Returns (B, (T-1)*stride + K  [or target_seq_length], Cout) float32.
    """
    B, T, Cin = x.shape
    Cin_w, Cout, K = weight.shape
    assert Cin_w == Cin
    KC = K * Cout

    LANE = 128
    Cinp = _round_up(Cin, LANE)       # full MXU contraction depth, unmasked loads
    KCp = _round_up(KC, LANE)         # lane-dense (unmasked) output stores

    # Tap-major flatten of the ConvTranspose1d weight, zero-padded, bf16 for the MXU.
    w_flat = jnp.transpose(weight, (0, 2, 1)).reshape(Cin, KC)
    w_flat = jnp.pad(w_flat, ((0, Cinp - Cin), (0, KCp - KC))).astype(jnp.bfloat16)

    # alpha padded with ones (padded input channels are zero -> contribute nothing).
    alpha_2d = jnp.pad(alpha.reshape(1, Cin).astype(jnp.float32),
                       ((0, 0), (0, Cinp - Cin)), constant_values=1.0)

    R = B * T
    vmem_limit, TR = _vmem_limit_and_row_tile(R, Cinp, KCp, row_tile)
    Rp = _round_up(R, TR)
    n_tiles = Rp // TR

    x_2d = x.reshape(R, Cin).astype(jnp.float32)
    x_2d = jnp.pad(x_2d, ((0, Rp - R), (0, Cinp - Cin)))

    cost = pl.CostEstimate(
        flops=2 * Rp * Cinp * KCp,
        transcendentals=Rp * Cinp,
        bytes_accessed=Rp * Cinp * 4 + Cinp * 4 + Cinp * KCp * 2 + Rp * KCp * 2,
    )

    def build(single_buffer_resident):
        res_kw = {"pipeline_mode": pl.Buffered(1)} if single_buffer_resident else {}
        return pl.pallas_call(
            _upscale_kernel,
            out_shape=jax.ShapeDtypeStruct((Rp, KCp), jnp.bfloat16),
            grid=(n_tiles,),
            in_specs=[
                pl.BlockSpec((TR, Cinp), lambda i: (i, 0)),              # streamed rows
                pl.BlockSpec((1, Cinp), lambda i: (0, 0), **res_kw),     # alpha: resident
                pl.BlockSpec((Cinp, KCp), lambda i: (0, 0), **res_kw),   # weight: resident
            ],
            out_specs=pl.BlockSpec((TR, KCp), lambda i: (i, 0)),
            compiler_params=pltpu.CompilerParams(
                dimension_semantics=("parallel",),   # independent row tiles -> megacore
                vmem_limit_bytes=vmem_limit,
            ),
            cost_estimate=cost,
        )

    try:
        out_2d = build(True)(x_2d, alpha_2d, w_flat)
        out_2d = jax.block_until_ready(out_2d)
    except Exception:
        # pipeline_mode=pl.Buffered(1) not supported on this jax build ->
        # fall back to default double-buffered resident operands.
        out_2d = build(False)(x_2d, alpha_2d, w_flat)

    # Overlap-add epilogue: out[b, t*stride + k, co] += tap_k[b, t, co].
    # TODO(synk): fuse the overlap-add into the kernel (phase-interleaved VMEM
    # accumulator with a (G-1)-row halo carried across row tiles) to remove the
    # remaining tap-sized HBM round trip.
    taps = out_2d[:R, :KC].astype(jnp.float32).reshape(B, T, K, Cout)
    L = (T - 1) * stride + K

    if K % stride == 0:
        # k = g*stride + p  ->  out[(t+g)*stride + p] += tap[t, g*stride + p].
        # Single fused pass: stack the G time-shifted slabs and sum once.
        G = K // stride
        taps_g = taps.reshape(B, T, G, stride, Cout)
        shifted = jnp.stack(
            [jnp.pad(taps_g[:, :, g], ((0, 0), (g, G - 1 - g), (0, 0), (0, 0)))
             for g in range(G)],
            axis=0,
        )
        acc = jnp.sum(shifted, axis=0)                       # (B, T+G-1, stride, Cout)
        y = acc.reshape(B, (T + G - 1) * stride, Cout) + bias[None, None, :]
        assert y.shape[1] == L
    else:
        # Rare fallback for K % stride != 0: strided scatter-add per tap.
        y = jnp.zeros((B, L, Cout), jnp.float32)
        for k in range(K):
            y = y.at[:, k: k + (T - 1) * stride + 1: stride, :].add(taps[:, :, k, :])
        y = y + bias[None, None, :]

    # _maybe_pad_or_trim semantics.
    if output_shape is not None:
        target = output_shape[-2]
        pad = target - y.shape[-2]
        if pad > 0:
            y = jnp.pad(y, ((0, 0), (0, pad), (0, 0)))
        elif pad < 0:
            y = y[:, :target, :]
    return y


def _reference(x, alpha, weight, bias, stride, output_shape=None):
    """Plain-JAX f32 reference mirroring the torch module (for sanity check)."""
    B, T, Cin = x.shape
    _, Cout, K = weight.shape
    a = alpha[None, :, None]                        # (1, Cin, 1)
    xc = jnp.transpose(x, (0, 2, 1))                # (B, Cin, T)
    act = xc + (1.0 / (a + 1e-9)) * jnp.sin(a * xc) ** 2
    L = (T - 1) * stride + K
    y = jnp.zeros((B, Cout, L), jnp.float32)
    for k in range(K):
        tap = jnp.einsum("bct,co->bot", act, weight[:, :, k])
        y = y.at[:, :, k: k + (T - 1) * stride + 1: stride].add(tap)
    y = y + bias[None, :, None]
    y = jnp.transpose(y, (0, 2, 1))
    if output_shape is not None:
        target = output_shape[-2]
        pad = target - y.shape[-2]
        if pad > 0:
            y = jnp.pad(y, ((0, 0), (0, pad), (0, 0)))
        elif pad < 0:
            y = y[:, :target, :]
    return y


if __name__ == "__main__":
    key = jax.random.PRNGKey(0)
    kx, kw, kb, kw2, kb2 = jax.random.split(key, 5)

    # Case 1: K % stride == 0 (fused shifted-stack overlap-add), natural length + trim.
    B, T, Cin, Cout, K, stride = 2, 8, 32, 64, 4, 2
    x = jax.random.normal(kx, (B, T, Cin), dtype=jnp.float32)
    alpha = jnp.ones((Cin,), dtype=jnp.float32)                        # torch.ones(dim, 1)
    weight = 0.05 * jax.random.normal(kw, (Cin, Cout, K), jnp.float32)
    bias = 0.01 * jax.random.normal(kb, (Cout,), jnp.float32)

    out = jax.block_until_ready(upscale_forward(x, alpha, weight, bias, stride))
    ref = _reference(x, alpha, weight, bias, stride)
    assert out.shape == (B, (T - 1) * stride + K, Cout)
    assert jnp.allclose(out, ref, atol=3e-2, rtol=3e-2)   # bf16 MXU operands + bf16 taps

    out2 = jax.block_until_ready(
        upscale_forward(x, alpha, weight, bias, stride, output_shape=(16, Cout))
    )
    ref2 = _reference(x, alpha, weight, bias, stride, output_shape=(16, Cout))
    assert out2.shape == (B, 16, Cout)
    assert jnp.allclose(out2, ref2, atol=3e-2, rtol=3e-2)

    # Case 2: K % stride != 0 -> exercises the strided-scatter fallback path
    # (and the KC -> 128 column padding, since K*Cout = 192).
    K2 = 3
    weight2 = 0.05 * jax.random.normal(kw2, (Cin, Cout, K2), jnp.float32)
    bias2 = 0.01 * jax.random.normal(kb2, (Cout,), jnp.float32)
    out3 = jax.block_until_ready(upscale_forward(x, alpha, weight2, bias2, stride))
    ref3 = _reference(x, alpha, weight2, bias2, stride)
    assert out3.shape == (B, (T - 1) * stride + K2, Cout)
    assert jnp.allclose(out3, ref3, atol=3e-2, rtol=3e-2)

    print("KERNEL_OK")
</pallas_src>

<mosaic_0001>
module attributes {stable_mosaic.version = 11 : i64} {
  func.func @_upscale_kernel(%arg0: i32, %arg1: memref<16x128xf32, #tpu.memory_space<vmem>>, %arg2: memref<1x128xf32, #tpu.memory_space<vmem>>, %arg3: memref<128x256xbf16, #tpu.memory_space<vmem>>, %arg4: memref<16x256xbf16, #tpu.memory_space<vmem>>) attributes {dimension_semantics = [#tpu.dimension_semantics<parallel>], iteration_bounds = array<i64: 1>, scalar_prefetch = 0 : i64, scratch_operands = 0 : i64, tpu.core_type = #tpu.core_type<tc>, window_params = [{transform_indices = @transform_0, window_bounds = array<i64: 16, 128>}, {pipeline_mode = #tpu.pipeline_mode<synchronous>, transform_indices = @transform_1, window_bounds = array<i64: 1, 128>}, {pipeline_mode = #tpu.pipeline_mode<synchronous>, transform_indices = @transform_2, window_bounds = array<i64: 128, 256>}, {transform_indices = @transform_3, window_bounds = array<i64: 16, 256>}]} {
    %c0 = arith.constant 0 : index
    %c0_0 = arith.constant 0 : index
    %0 = vector.load %arg1[%c0, %c0_0] : memref<16x128xf32, #tpu.memory_space<vmem>>, vector<16x128xf32>
    %c0_1 = arith.constant 0 : index
    %c0_2 = arith.constant 0 : index
    %1 = vector.load %arg2[%c0_1, %c0_2] : memref<1x128xf32, #tpu.memory_space<vmem>>, vector<1x128xf32>
    %cst = arith.constant 9.99999971E-10 : f32
    %2 = vector.broadcast %cst : f32 to vector<1x128xf32>
    %3 = arith.addf %1, %2 : vector<1x128xf32>
    %4 = tpu.reciprocal %3 {approx = true} : vector<1x128xf32> -> vector<1x128xf32>
    %5 = vector.broadcast %1 : vector<1x128xf32> to vector<16x128xf32>
    %6 = arith.mulf %5, %0 : vector<16x128xf32>
    %7 = math.sin %6 : vector<16x128xf32>
    %8 = arith.mulf %7, %7 : vector<16x128xf32>
    %9 = vector.broadcast %4 : vector<1x128xf32> to vector<16x128xf32>
    %10 = arith.mulf %9, %8 : vector<16x128xf32>
    %11 = arith.addf %0, %10 : vector<16x128xf32>
    %12 = arith.truncf %11 : vector<16x128xf32> to vector<16x128xbf16>
    %c0_3 = arith.constant 0 : index
    %c0_4 = arith.constant 0 : index
    %13 = vector.load %arg3[%c0_3, %c0_4] : memref<128x256xbf16, #tpu.memory_space<vmem>>, vector<128x256xbf16>
    %cst_5 = arith.constant dense<0.000000e+00> : vector<16x256xf32>
    %14 = tpu.matmul %12, %13, %cst_5 {dimension_numbers = #tpu.dot_dimension_numbers<[1], [0], [0], [1], [0, 0, 1, 1], [], []>} : vector<16x128xbf16>, vector<128x256xbf16>, vector<16x256xf32> -> vector<16x256xf32>
    %15 = arith.truncf %14 : vector<16x256xf32> to vector<16x256xbf16>
    %c0_6 = arith.constant 0 : index
    %c0_7 = arith.constant 0 : index
    %16 = vector.load %arg4[%c0_6, %c0_7] : memref<16x256xbf16, #tpu.memory_space<vmem>>, vector<16x256xbf16>
    tpu.vector_store %arg4[%c0_6, %c0_7], %15 {strides = array<i32>} : memref<16x256xbf16, #tpu.memory_space<vmem>>, vector<16x256xbf16>,
    return
  }
  func.func @transform_0(%arg0: i32) -> (i32, i32) {
    %c0_i32 = arith.constant 0 : i32
    %c0_i32_0 = arith.constant 0 : i32
    return %arg0, %c0_i32 : i32, i32
  }
  func.func @transform_1(%arg0: i32) -> (i32, i32) {
    %c0_i32 = arith.constant 0 : i32
    %c0_i32_0 = arith.constant 0 : i32
    %c0_i32_1 = arith.constant 0 : i32
    return %c0_i32, %c0_i32_0 : i32, i32
  }
  func.func @transform_2(%arg0: i32) -> (i32, i32) {
    %c0_i32 = arith.constant 0 : i32
    %c0_i32_0 = arith.constant 0 : i32
    %c0_i32_1 = arith.constant 0 : i32
    return %c0_i32, %c0_i32_0 : i32, i32
  }
  func.func @transform_3(%arg0: i32) -> (i32, i32) {
    %c0_i32 = arith.constant 0 : i32
    %c0_i32_0 = arith.constant 0 : i32
    return %arg0, %c0_i32 : i32, i32
  }
}

module attributes {stable_mosaic.version = 11 : i64} {
  func.func @_upscale_kernel(%arg0: i32, %arg1: memref<16x128xf32, #tpu.memory_space<vmem>>, %arg2: memref<1x128xf32, #tpu.memory_space<vmem>>, %arg3: memref<128x256xbf16, #tpu.memory_space<vmem>>, %arg4: memref<16x256xbf16, #tpu.memory_space<vmem>>) attributes {dimension_semantics = [#tpu.dimension_semantics<parallel>], iteration_bounds = array<i64: 1>, scalar_prefetch = 0 : i64, scratch_operands = 0 : i64, tpu.core_type = #tpu.core_type<tc>, window_params = [{transform_indices = @transform_0, window_bounds = array<i64: 16, 128>}, {pipeline_mode = #tpu.pipeline_mode<synchronous>, transform_indices = @transform_1, window_bounds = array<i64: 1, 128>}, {pipeline_mode = #tpu.pipeline_mode<synchronous>, transform_indices = @transform_2, window_bounds = array<i64: 128, 256>}, {transform_indices = @transform_3, window_bounds = array<i64: 16, 256>}]} {
    %c0 = arith.constant 0 : index
    %c0_0 = arith.constant 0 : index
    %0 = vector.load %arg1[%c0, %c0_0] : memref<16x128xf32, #tpu.memory_space<vmem>>, vector<16x128xf32>
    %c0_1 = arith.constant 0 : index
    %c0_2 = arith.constant 0 : index
    %1 = vector.load %arg2[%c0_1, %c0_2] : memref<1x128xf32, #tpu.memory_space<vmem>>, vector<1x128xf32>
    %cst = arith.constant 9.99999971E-10 : f32
    %2 = vector.broadcast %cst : f32 to vector<1x128xf32>
    %3 = arith.addf %1, %2 : vector<1x128xf32>
    %4 = tpu.reciprocal %3 {approx = true} : vector<1x128xf32> -> vector<1x128xf32>
    %5 = vector.broadcast %1 : vector<1x128xf32> to vector<16x128xf32>
    %6 = arith.mulf %5, %0 : vector<16x128xf32>
    %7 = math.sin %6 : vector<16x128xf32>
    %8 = arith.mulf %7, %7 : vector<16x128xf32>
    %9 = vector.broadcast %4 : vector<1x128xf32> to vector<16x128xf32>
    %10 = arith.mulf %9, %8 : vector<16x128xf32>
    %11 = arith.addf %0, %10 : vector<16x128xf32>
    %12 = arith.truncf %11 : vector<16x128xf32> to vector<16x128xbf16>
    %c0_3 = arith.constant 0 : index
    %c0_4 = arith.constant 0 : index
    %13 = vector.load %arg3[%c0_3, %c0_4] : memref<128x256xbf16, #tpu.memory_space<vmem>>, vector<128x256xbf16>
    %cst_5 = arith.constant dense<0.000000e+00> : vector<16x256xf32>
    %14 = tpu.matmul %12, %13, %cst_5 {dimension_numbers = #tpu.dot_dimension_numbers<[1], [0], [0], [1], [0, 0, 1, 1], [], []>} : vector<16x128xbf16>, vector<128x256xbf16>, vector<16x256xf32> -> vector<16x256xf32>
    %15 = arith.truncf %14 : vector<16x256xf32> to vector<16x256xbf16>
    %c0_6 = arith.constant 0 : index
    %c0_7 = arith.constant 0 : index
    %16 = vector.load %arg4[%c0_6, %c0_7] : memref<16x256xbf16, #tpu.memory_space<vmem>>, vector<16x256xbf16>
    tpu.vector_store %arg4[%c0_6, %c0_7], %15 {strides = array<i32>} : memref<16x256xbf16, #tpu.memory_space<vmem>>, vector<16x256xbf16>,
    return
  }
  func.func @transform_0(%arg0: i32) -> (i32, i32) {
    %c0_i32 = arith.constant 0 : i32
    %c0_i32_0 = arith.constant 0 : i32
    return %arg0, %c0_i32 : i32, i32
  }
  func.func @transform_1(%arg0: i32) -> (i32, i32) {
    %c0_i32 = arith.constant 0 : i32
    %c0_i32_0 = arith.constant 0 : i32
    %c0_i32_1 = arith.constant 0 : i32
    return %c0_i32, %c0_i32_0 : i32, i32
  }
  func.func @transform_2(%arg0: i32) -> (i32, i32) {
    %c0_i32 = arith.constant 0 : i32
    %c0_i32_0 = arith.constant 0 : i32
    %c0_i32_1 = arith.constant 0 : i32
    return %c0_i32, %c0_i32_0 : i32, i32
  }
  func.func @transform_3(%arg0: i32) -> (i32, i32) {
    %c0_i32 = arith.constant 0 : i32
    %c0_i32_0 = arith.constant 0 : i32
    return %arg0, %c0_i32 : i32, i32
  }
}

</mosaic_0001>

<bundles_post_ra>
// kernel: tpu_custom_call.1
= control target key start
LH: loop header
LB: loop body
LE: loop exit
PB: predicated region body
PF: predicated region fallthrough
CT: control target
= control target key end

     0   :  { %8 = vsyncpa [#allocation3], 0  ;;  %s765_s0 = inlined_call_operand.hbm [shape: f32[16,128], index: 0, kind: input, shape index: {}]   ;;  %s766_s1 = inlined_call_operand.vmem [shape: f32[1,128], index: 1, kind: input, shape index: {}]   ;;  %s767_s2 = inlined_call_operand.hbm [shape: bf16[128,256], index: 2, kind: input, shape index: {}]   ;;  %s768_s3 = inlined_call_operand.hbm [shape: bf16[16,256], index: 3, kind: output, shape index: {}]  }
   0x1   :  { %9 = vsyncpa [#allocation6], 0 }
   0x2   :  { %10 = vsyncpa [#allocation4], 0  ;;  %s603_s12 = smov [#allocation2]   ;;  %s531_s16 = scalar_lea.hbm %s765_s0, 256 }
   0x3   :  { %s16_s13 = sshll.u32 %s603_s12, 4  ;;  %p532_p0 = scmp.ne.s32.totalorder %s765_s0, %s531_s16  ;;  %s17_s13 = int_to_ptr.vmem [resolvable:$true] %s16_s13 }
   0x4   :  { %p535_p1 = scmp.lt.u32.totalorder %s531_s16, %s765_s0 }
   0x6   :  { %p537_p2 = pnand %p535_p1, %p532_p0 }
   0x8   :  { %540 = shalt.err (!%p537_p2)
}
   0x9   :  { %s541_s21 = scalar_lea.vmem %s17_s13, 256  ;;  %p546_p4 = scmp.lt.s32.totalorder %s17_s13, %s17_s13 }
   0xa   :  { %p542_p3 = scmp.ne.s32.totalorder %s17_s13, %s541_s21  ;;  %p547_p5 = scmp.lt.s32.totalorder %s541_s21, %s541_s21 }
   0xc   :  { %p548_p6 = por %p547_p5, %p546_p4 }
   0xe   :  { %p549_p7 = pnand %p548_p6, %p542_p3 }
  0x10   :  { %552 = shalt.err (!%p549_p7)
}
  0x11   :  { %s604_s22 = smov 128   ;;  %s605_s23 = smov 8  }
  0x12   :  { %22 = dma.hbm_to_vmem [thread:$0]  %s765_s0, 256, %s17_s13, [#allocation3], %s604_s22, %s604_s22, %s605_s23  }
  0x13   :  { %s606_s26 = smov [#allocation5]   ;;  %s553_s30 = scalar_lea.hbm %s767_s2, 2048 }
  0x14   :  { %s30_s27 = sshll.u32 %s606_s26, 4  ;;  %p554_p8 = scmp.ne.s32.totalorder %s767_s2, %s553_s30  ;;  %s31_s27 = int_to_ptr.vmem [resolvable:$true] %s30_s27 }
  0x15   :  { %p557_p9 = scmp.lt.u32.totalorder %s553_s30, %s767_s2 }
  0x17   :  { %p559_p10 = pnand %p557_p9, %p554_p8 }
  0x19   :  { %562 = shalt.err (!%p559_p10)
}
  0x1a   :  { %s563_s8 = scalar_lea.vmem %s31_s27, 2048  ;;  %p568_p12 = scmp.lt.s32.totalorder %s31_s27, %s31_s27 }
  0x1b   :  { %p564_p11 = scmp.ne.s32.totalorder %s31_s27, %s563_s8  ;;  %p569_p13 = scmp.lt.s32.totalorder %s563_s8, %s563_s8 }
  0x1d   :  { %p570_p0 = por %p569_p13, %p568_p12 }
  0x1f   :  { %p571_p1 = pnand %p570_p0, %p564_p11 }
  0x21   :  { %574 = shalt.err (!%p571_p1)
}
  0x22   :  { %36 = dma.hbm_to_vmem [thread:$0]  %s767_s2, 2048, %s31_s27, [#allocation6], %s604_s22, %s604_s22, %s605_s23  }
  0x23   :  { %597 = dma.done.wait [#allocation3], 256  }
  0x24   :  { %598 = vsyncadd [#allocation3], 4294967040 }
  0x25   :  { %599 = dma.done.wait [#allocation6], 2048  }
  0x26   :  { %600 = vsyncadd [#allocation6], 4294965248  ;;  %v607_v0 = vmov 0   ;;  %v497_v1 = vld [vmem:[#allocation5 + $0x4] ss:$8 sps:$4 sm:$0xff]   ;;  %v50_v2 = vlaneseq  ;;  %v665_v12 = vld [vmem:[#allocation2] sm:$0xff] }
  0x27   :  { %406 = vmatprep.mubr.bf16.mxu0 %v607_v0  ;;  %v499_v3 = vld [vmem:[#allocation5] ss:$8 sps:$4 sm:$0xff]   ;;  %374 = vmatprep.subr.bf16.mxu0 %v497_v1  ;;  %v500_v4 = vld [vmem:[#allocation5 + $0x14] ss:$8 sps:$4 sm:$0xff]   ;;  %v502_v5 = vld [vmem:[#allocation5 + $0x10] ss:$8 sps:$4 sm:$0xff]  }
  0x28   :  { %375 = vmatpush1.bf16.msra.mxu0 %v499_v3  ;;  %v503_v6 = vld [vmem:[#allocation5 + $0x24] ss:$8 sps:$4 sm:$0xff]   ;;  %v51_v7 = vshrl.u32 %v50_v2, 7  ;;  %v505_v8 = vld [vmem:[#allocation5 + $0x20] ss:$8 sps:$4 sm:$0xff]   ;;  %v667_v13 = vld [vmem:[#allocation2 + $0x8] sm:$0xff] }
  0x29   :  { %376 = vmatprep.subr.bf16.mxu0 %v500_v4  ;;  %v506_v9 = vld [vmem:[#allocation5 + $0x34] ss:$8 sps:$4 sm:$0xff]   ;;  %v508_v11 = vld [vmem:[#allocation5 + $0x30] ss:$8 sps:$4 sm:$0xff]   ;;  %v509_v15 = vld [vmem:[#allocation5 + $0x44] ss:$8 sps:$4 sm:$0xff]  }
  0x2a   :  { %v52_v10 = vsub.s32 0, %v51_v7  ;;  %v46_v14 = vld [vmem:[%s766_s1] sm:$0x1]  ;;  %v511_v20 = vld [vmem:[#allocation5 + $0x40] ss:$8 sps:$4 sm:$0xff]   ;;  %s614_s1 = smov [#allocation7]  }
  0x2b   :  { %v47_v16 = vadd.f32 1e-09, %v46_v14  ;;  %v512_v21 = vld [vmem:[#allocation5 + $0x54] ss:$8 sps:$4 sm:$0xff]   ;;  %v514_v26 = vld [vmem:[#allocation5 + $0x50] ss:$8 sps:$4 sm:$0xff]  }
  0x2c   :  { %377 = vmatpush1.bf16.msra.mxu0 %v502_v5  ;;  %v53_v17 = vrot.slane %v46_v14, %v52_v10  ;;  %v515_v31 = vld [vmem:[#allocation5 + $0x64] ss:$8 sps:$4 sm:$0xff]   ;;  %v517_v35 = vld [vmem:[#allocation5 + $0x60] ss:$8 sps:$4 sm:$0xff]   ;;  %v518_v40 = vld [vmem:[#allocation5 + $0x74] ss:$8 sps:$4 sm:$0xff]  }
  0x2d   :  { %378 = vmatprep.subr.bf16.mxu0 %v503_v6  ;;  %521 = vrcp.f32 %v47_v16  ;;  %v520_v46 = vld [vmem:[#allocation5 + $0x70] ss:$8 sps:$4 sm:$0xff]   ;;  %v608_v51 = vmov 683565275   ;;  %v609_v53 = vmov 2475754826  }
  0x2e   :  { %v673_v18 = vmul.f32 %v53_v17, %v665_v12  ;;  %v676_v19 = vmul.f32 %v53_v17, %v667_v13  ;;  %v610_v55 = vmov 2131351028   ;;  %v611_v57 = vmov 2102212464   ;;  %s436_s11 = sshll.u32 %s614_s1, 4  ;;  %s437_s11 = int_to_ptr.vmem [resolvable:$true] %s436_s11 }
  0x2f   :  { %v612_v59 = vmov 920167782   ;;  %v613_v3 = vmov 1326507024   ;;  %s575_s12 = scalar_lea.vmem %s437_s11, 256  ;;  %p580_p3 = scmp.lt.s32.totalorder %s437_s11, %s437_s11 }
  0x30   :  { %379 = vmatpush1.bf16.msra.mxu0 %v505_v8  ;;  %v57_v22 = vand.u32 2147483647, %v673_v18  ;;  %v60_v23 = vand.u32 2139095040, %v673_v18  ;;  %v161_v24 = vand.u32 2147483647, %v676_v19  ;;  %v164_v25 = vand.u32 2139095040, %v676_v19  ;;  %p576_p2 = scmp.ne.s32.totalorder %s437_s11, %s575_s12  ;;  %p581_p4 = scmp.lt.s32.totalorder %s575_s12, %s575_s12 }
  0x31   :  { %380 = vmatprep.subr.bf16.mxu0 %v506_v9  ;;  %vm59_vm14 = vcmp.lt.s32.totalorder %v673_v18, 0 }
  0x32   :  { %v61_v27 = vshrl.u32 %v60_v23, 23  ;;  %v64_v28 = vand.u32 8388607, %v57_v22  ;;  %v165_v29 = vshrl.u32 %v164_v25, 23  ;;  %v168_v30 = vand.u32 8388607, %v161_v24  ;;  %p582_p5 = por %p581_p4, %p580_p3 }
  0x33   :  { %vm58_vm15 = vcmp.le.f32.partialorder %v57_v22, 0.7853982 }
  0x34   :  { %381 = vmatpush1.bf16.msra.mxu0 %v508_v11  ;;  %v449_v32 = vadd.s32 4294967169, %v61_v27  ;;  %v453_v33 = vadd.s32 4294967169, %v165_v29  ;;  %v65_v36 = vor.u32 8388608, %v64_v28  ;;  %v169_v37 = vor.u32 8388608, %v168_v30  ;;  %p583_p6 = pnand %p582_p5, %p576_p2 }
  0x35   :  { %382 = vmatprep.subr.bf16.mxu0 %v509_v15 }
  0x36   :  { %v67_v34 = vadd.s32 1, %v449_v32  ;;  %v171_v38 = vadd.s32 1, %v453_v33  ;;  %v688_v47 = vshll.u32 %v65_v36, 8  ;;  %v690_v49 = vshll.u32 %v169_v37, 8 }
  0x37   :  { %v522_v39 = vpop.eup %521 }
  0x38   :  { %383 = vmatpush1.bf16.msra.mxu0 %v511_v20  ;;  %vm68_vm0 = vcmp.gt.s32.totalorder %v67_v34, 0  ;;  %vm172_vm1 = vcmp.gt.s32.totalorder %v171_v38, 0  ;;  %v686_v42 = vrot.slane %v522_v39, %v52_v10 }
  0x39   :  { %384 = vmatprep.subr.bf16.mxu0 %v512_v21  ;;  %v69_v41 = vsel %vm68_vm0, %v67_v34, 0  ;;  %v173_v45 = vsel %vm172_vm1, %v171_v38, 0  ;;  %vm163_vm0 = vcmp.lt.s32.totalorder %v676_v19, 0  ;;  %vm162_vm1 = vcmp.le.f32.partialorder %v161_v24, 0.7853982 }
  0x3a   :  { %v70_v43 = vshrl.u32 %v69_v41, 5  ;;  %v71_v44 = vand.u32 31, %v69_v41  ;;  %v175_v48 = vand.u32 31, %v173_v45  ;;  %v692_v61 = vshrl.u32 %v173_v45, 5 }
  0x3c   :  { %385 = vmatpush1.bf16.msra.mxu0 %v514_v26  ;;  %v72_v50 = vsub.s32 32, %v71_v44  ;;  %v74_v52 = vshll.u32 %v608_v51, %v71_v44  ;;  %v77_v54 = vshll.u32 %v609_v53, %v71_v44  ;;  %v80_v56 = vshll.u32 %v610_v55, %v71_v44 }
  0x3d   :  { %386 = vmatprep.subr.bf16.mxu0 %v515_v31  ;;  %v83_v58 = vshll.u32 %v611_v57, %v71_v44  ;;  %v86_v60 = vshll.u32 %v612_v59, %v71_v44  ;;  %vm89_vm2 = vcmp.lt.s32.totalorder %v70_v43, 1  ;;  %vm90_vm3 = vcmp.lt.s32.totalorder %v70_v43, 2 }
  0x3e   :  { %v73_v62 = vshrl.u32 %v608_v51, %v72_v50  ;;  %v75_v63 = vshrl.u32 %v609_v53, %v72_v50  ;;  %v78_v0 = vshrl.u32 %v610_v55, %v72_v50  ;;  %v81_v1 = vshrl.u32 %v611_v57, %v72_v50 }
  0x3f   :  { %v84_v2 = vshrl.u32 %v612_v59, %v72_v50  ;;  %v87_v4 = vshrl.u32 %v613_v3, %v72_v50  ;;  %vm92_vm4 = vcmp.lt.s32.totalorder %v70_v43, 4  ;;  %v176_v8 = vsub.s32 32, %v175_v48 }
  0x40   :  { %387 = vmatpush1.bf16.msra.mxu0 %v517_v35  ;;  %v76_v5 = vor.u32 %v75_v63, %v74_v52  ;;  %v79_v6 = vor.u32 %v78_v0, %v77_v54  ;;  %v82_v7 = vor.u32 %v81_v1, %v80_v56  ;;  %vm91_vm5 = vcmp.lt.s32.totalorder %v70_v43, 3 }
  0x41   :  { %388 = vmatprep.subr.bf16.mxu0 %v518_v40  ;;  %v85_v9 = vor.u32 %v84_v2, %v83_v58  ;;  %v88_v10 = vor.u32 %v87_v4, %v86_v60  ;;  %v178_v11 = vshll.u32 %v608_v51, %v175_v48  ;;  %v181_v25 = vshll.u32 %v609_v53, %v175_v48 }
  0x42   :  { %v93_v14 = vsel %vm89_vm2, %v73_v62, %v76_v5  ;;  %v94_v15 = vsel %vm92_vm4, %v82_v7, 2102212464  ;;  %v97_v16 = vsel %vm89_vm2, %v76_v5, %v79_v6  ;;  %v101_v17 = vsel %vm89_vm2, %v79_v6, %v82_v7 }
  0x43   :  { %v95_v20 = vsel %vm91_vm5, %v79_v6, %v94_v15  ;;  %v98_v21 = vsel %vm92_vm4, %v85_v9, 920167782  ;;  %v102_v23 = vsel %vm92_vm4, %v88_v10, 1326507024  ;;  %v177_v28 = vshrl.u32 %v608_v51, %v176_v8 }
  0x44   :  { %389 = vmatpush1.bf16.msra.mxu0 %v520_v46  ;;  %v99_v26 = vsel %vm91_vm5, %v82_v7, %v98_v21  ;;  %v103_v27 = vsel %vm91_vm5, %v85_v9, %v102_v23  ;;  %v179_v29 = vshrl.u32 %v609_v53, %v176_v8  ;;  %v96_v30 = vsel %vm90_vm3, %v93_v14, %v95_v20 }
  0x45   :  { %v100_v31 = vsel %vm90_vm3, %v97_v16, %v99_v26  ;;  %v104_v32 = vsel %vm90_vm3, %v101_v17, %v103_v27  ;;  %v182_v33 = vshrl.u32 %v610_v55, %v176_v8  ;;  %v184_v40 = vshll.u32 %v610_v55, %v175_v48 }
  0x46   :  { %v701_v34 = vmul.u32.u64.low %v688_v47, %v104_v32  ;;  %v702_v35 = vmul.u32.u64.high %v688_v47, %v104_v32, %v701_v34  ;;  %v705_v36 = vmul.u32.u64.low %v688_v47, %v100_v31  ;;  %v706_v37 = vmul.u32.u64.high %v688_v47, %v100_v31, %v705_v36 }
  0x47   :  { %v180_v38 = vor.u32 %v179_v29, %v178_v11  ;;  %v183_v39 = vor.u32 %v182_v33, %v181_v25  ;;  %v185_v41 = vshrl.u32 %v611_v57, %v176_v8  ;;  %v187_v44 = vshll.u32 %v611_v57, %v175_v48 }
  0x48   :  { %v188_v45 = vshrl.u32 %v612_v59, %v176_v8  ;;  %v190_v46 = vshll.u32 %v612_v59, %v175_v48  ;;  %v191_v50 = vshrl.u32 %v613_v3, %v176_v8  ;;  %v112_v43 = vmul.u32 %v688_v47, %v96_v30 }
  0x49   :  { %v186_v51 = vor.u32 %v185_v41, %v184_v40  ;;  %vm193_vm6 = vcmp.lt.s32.totalorder %v692_v61, 1  ;;  %vm194_vm7 = vcmp.lt.s32.totalorder %v692_v61, 2  ;;  %vm114_vm8 = vc.u32 %v702_v35, %v705_v36 }
  0x4a   :  { %v115_v52 = vadd.s32 1, %v706_v37  ;;  %v189_v53 = vor.u32 %v188_v45, %v187_v44  ;;  %vm195_vm9 = vcmp.lt.s32.totalorder %v692_v61, 3  ;;  %v192_v54 = vor.u32 %v191_v50, %v190_v46 }
  0x4b   :  { %vm196_vm10 = vcmp.lt.s32.totalorder %v692_v61, 4  ;;  %v197_v55 = vsel %vm193_vm6, %v177_v28, %v180_v38  ;;  %v201_v48 = vsel %vm193_vm6, %v180_v38, %v183_v39  ;;  %v205_v58 = vsel %vm193_vm6, %v183_v39, %v186_v51 }
  0x4c   :  { %v116_v56 = vsel %vm114_vm8, %v115_v52, %v706_v37  ;;  %v198_v47 = vsel %vm196_vm10, %v186_v51, 2102212464  ;;  %v202_v57 = vsel %vm196_vm10, %v189_v53, 920167782  ;;  %v206_v63 = vsel %vm196_vm10, %v192_v54, 1326507024 }
  0x4d   :  { %v117_v59 = vadd.s32 %v116_v56, %v112_v43  ;;  %v199_v60 = vsel %vm195_vm9, %v183_v39, %v198_v47  ;;  %v203_v62 = vsel %vm195_vm9, %v186_v51, %v202_v57  ;;  %v207_v2 = vsel %vm195_vm9, %v189_v53, %v206_v63 }
  0x4e   :  { %v200_v0 = vsel %vm194_vm7, %v197_v55, %v199_v60  ;;  %v204_v1 = vsel %vm194_vm7, %v201_v48, %v203_v62  ;;  %v208_v4 = vsel %vm194_vm7, %v205_v58, %v207_v2  ;;  %v113_v29 = vadd.s32 %v705_v36, %v702_v35 }
  0x4f   :  { %v118_v3 = vadd.s32 536870912, %v117_v59  ;;  %v723_v5 = vmul.u32.u64.low %v690_v49, %v204_v1  ;;  %v724_v6 = vmul.u32.u64.high %v690_v49, %v204_v1, %v723_v5  ;;  %v216_v10 = vmul.u32 %v690_v49, %v200_v0 }
  0x50   :  { %v727_v7 = vmul.u32.u64.low %v690_v49, %v208_v4  ;;  %v728_v8 = vmul.u32.u64.high %v690_v49, %v208_v4, %v727_v7  ;;  %vm149_vm5 = vweird.f32 %v673_v18  ;;  %vm253_vm9 = vweird.f32 %v676_v19 }
  0x51   :  { %v119_v9 = vshrl.u32 %v118_v3, 30  ;;  %v219_v14 = vadd.s32 1, %v724_v6 }
  0x52   :  { %vm218_vm11 = vc.u32 %v728_v8, %v723_v5  ;;  %v217_v50 = vadd.s32 %v723_v5, %v728_v8 }
  0x53   :  { %v120_v11 = vshll.u32 %v119_v9, 30  ;;  %v220_v61 = vsel %vm218_vm11, %v219_v14, %v724_v6  ;;  %v143_v35 = vsub.s32 4, %v119_v9 }
  0x54   :  { %v221_v16 = vadd.s32 %v220_v61, %v216_v10 }
  0x55   :  { %v121_v15 = vsub.s32 %v117_v59, %v120_v11  ;;  %v144_v47 = vsel %vm59_vm14, %v143_v35, %v119_v9 }
  0x56   :  { %v222_v20 = vadd.s32 536870912, %v221_v16  ;;  %v146_v62 = vsel %vm58_vm15, 0, %v144_v47 }
  0x57   :  { %v123_v17 = vsub.s32 0, %v121_v15  ;;  %v150_v3 = vadd.s32 3, %v146_v62 }
  0x58   :  { %v223_v23 = vshrl.u32 %v222_v20, 30 }
  0x59   :  { %v450_v21 = vmin.u32 %v123_v17, %v121_v15  ;;  %v151_v6 = vand.u32 3, %v150_v3 }
  0x5a   :  { %v224_v26 = vshll.u32 %v223_v23, 30  ;;  %v247_v2 = vsub.s32 4, %v223_v23 }
  0x5b   :  { %v125_v25 = vclz %v450_v21  ;;  %vm156_vm2 = vcmp.eq.s32.totalorder %v151_v6, 2  ;;  %vm153_vm3 = vcmp.eq.s32.totalorder %v151_v6, 0  ;;  %vm152_vm4 = vcmp.lt.s32.totalorder %v151_v6, 2 }
  0x5c   :  { %v225_v28 = vsub.s32 %v221_v16, %v224_v26  ;;  %v248_v5 = vsel %vm163_vm0, %v247_v2, %v223_v23 }
  0x5d   :  { %v451_v27 = vadd.s32 4294967294, %v125_v25  ;;  %v250_v9 = vsel %vm162_vm1, 0, %v248_v5 }
  0x5e   :  { %v227_v30 = vsub.s32 0, %v225_v28 }
  0x5f   :  { %vm452_vm12 = vcmp.lt.s32.totalorder %v451_v27, 0 }
  0x60   :  { %v128_v49 = vsel %vm452_vm12, 0, %v451_v27  ;;  %v454_v34 = vmin.u32 %v227_v30, %v225_v28 }
  0x61   :  { %v129_v31 = vsub.s32 32, %v128_v49  ;;  %v130_v32 = vshll.u32 %v121_v15, %v128_v49  ;;  %v133_v33 = vsub.s32 4294967266, %v128_v49  ;;  %v254_v15 = vadd.s32 3, %v250_v9 }
  0x62   :  { %v229_v39 = vclz %v454_v34 }
  0x63   :  { %v131_v37 = vshrl.u32 %v113_v29, %v129_v31  ;;  %v134_v38 = vadd.s32 127, %v133_v33  ;;  %v255_v20 = vand.u32 3, %v254_v15 }
  0x64   :  { %v455_v44 = vadd.s32 4294967294, %v229_v39 }
  0x65   :  { %v132_v40 = vor.u32 %v131_v37, %v130_v32  ;;  %v135_v41 = vshll.u32 %v134_v38, 23  ;;  %vm260_vm6 = vcmp.eq.s32.totalorder %v255_v20, 2  ;;  %vm257_vm7 = vcmp.eq.s32.totalorder %v255_v20, 0 }
  0x66   :  { %vm456_vm13 = vcmp.lt.s32.totalorder %v455_v44, 0  ;;  %vm256_vm8 = vcmp.lt.s32.totalorder %v255_v20, 2 }
  0x67   :  { %v136_v45 = vor.u32 4788187, %v135_v41  ;;  %v139_v46 = vcvt.s32.f32 %v132_v40  ;;  %v232_v36 = vsel %vm456_vm13, 0, %v455_v44 }
  0x68   :  { %v233_v51 = vsub.s32 32, %v232_v36  ;;  %v234_v52 = vshll.u32 %v225_v28, %v232_v36  ;;  %v237_v53 = vsub.s32 4294967266, %v232_v36 }
  0x69   :  { %v137_v43 = vand.u32 2147483647, %v136_v45 }
  0x6a   :  { %v235_v55 = vshrl.u32 %v217_v50, %v233_v51  ;;  %v238_v48 = vadd.s32 127, %v237_v53 }
  0x6b   :  { %v140_v54 = vmul.f32 %v139_v46, %v137_v43 }
  0x6c   :  { %v236_v57 = vor.u32 %v235_v55, %v234_v52  ;;  %v239_v58 = vshll.u32 %v238_v48, 23 }
  0x6d   :  { %v141_v56 = vxor.u32 2147483648, %v140_v54 }
  0x6e   :  { %v240_v63 = vor.u32 4788187, %v239_v58  ;;  %v243_v0 = vcvt.s32.f32 %v236_v57 }
  0x6f   :  { %v142_v59 = vsel %vm59_vm14, %v141_v56, %v140_v54 }
  0x70   :  { %v145_v60 = vsel %vm58_vm15, %v673_v18, %v142_v59  ;;  %v241_v1 = vand.u32 2147483647, %v240_v63 }
  0x71   :  { %523 = vcosq.f32 %v145_v60 }
  0x72   :  { %525 = vsinq.f32 %v145_v60  ;;  %v244_v4 = vmul.f32 %v243_v0, %v241_v1 }
  0x74   :  { %v245_v22 = vxor.u32 2147483648, %v244_v4 }
  0x76   :  { %v246_v7 = vsel %vm163_vm0, %v245_v22, %v244_v4 }
  0x77   :  { %v249_v8 = vsel %vm162_vm1, %v676_v19, %v246_v7 }
  0x78   :  { %527 = vcosq.f32 %v249_v8 }
  0x79   :  { %529 = vsinq.f32 %v249_v8 }
  0x7b   :  { %v524_v10 = vpop.eup %523 }
  0x7c   :  { %v526_v11 = vpop.eup %525  ;;  %v157_v14 = vxor.u32 2147483648, %v524_v10 }
  0x7d   :  { %v154_v61 = vxor.u32 2147483648, %v526_v11 }
  0x7e   :  { %v158_v24 = vsel %vm156_vm2, %v157_v14, %v526_v11 }
  0x7f   :  { %v155_v16 = vsel %vm153_vm3, %v524_v10, %v154_v61 }
  0x80   :  { %v159_v17 = vsel %vm152_vm4, %v155_v16, %v158_v24 }
  0x81   :  { %v160_v21 = vsel %vm149_vm5, nan, %v159_v17 }
  0x82   :  { %v265_v23 = vmul.f32 %v160_v21, %v160_v21  ;;  %v528_v25 = vpop.eup %527 }
  0x83   :  { %v530_v27 = vpop.eup %529  ;;  %v261_v28 = vxor.u32 2147483648, %v528_v25 }
  0x84   :  { %v273_v26 = vmul.f32 %v686_v42, %v265_v23  ;;  %v258_v29 = vxor.u32 2147483648, %v530_v27 }
  0x85   :  { %v262_v49 = vsel %vm260_vm6, %v261_v28, %v530_v27 }
  0x86   :  { %v259_v30 = vsel %vm257_vm7, %v528_v25, %v258_v29  ;;  %v275_v34 = vadd.f32 %v273_v26, %v665_v12 }
  0x87   :  { %v263_v18 = vsel %vm256_vm8, %v259_v30, %v262_v49 }
  0x88   :  { %v264_v31 = vsel %vm253_vm9, nan, %v263_v18 }
  0x89   :  { %v266_v32 = vmul.f32 %v264_v31, %v264_v31 }
  0x8b   :  { %v274_v33 = vmul.f32 %v686_v42, %v266_v32 }
  0x8d   :  { %v276_v37 = vadd.f32 %v274_v33, %v667_v13 }
  0x8f   :  { %v277_v38 = vpack.c.bf16 %v276_v37, %v275_v34 }
  0x91   :  { %407 = vmatmul.mubr.bf16.vlgmr.msra.gmra.mrb[0].mxu0 %v277_v38 }
 0x164   :  { %v408_v39 = vpop.f32.mrb[0].mxu0 }
 0x165   :  { %v410_v40 = vpop.f32.mrb[1].mxu0 }
 0x166   :  { %v475_v41 = vpack.c.bf16 %v410_v40, %v408_v39  ;;  %v412_v44 = vpop.f32.mrb[2].mxu0 }
 0x167   :  { %v414_v19 = vpop.f32.mrb[3].mxu0 }
 0x168   :  { %429 = vst [vmem:[#allocation7] sm:$0xff] %v475_v41  ;;  %v476_v45 = vpack.c.bf16 %v414_v19, %v412_v44 }
 0x16a   :  { %430 = vst [vmem:[#allocation7 + $0x8] sm:$0xff] %v476_v45 }
 0x16b   :  { %586 = shalt.err (!%p583_p6)
}
 0x16c   :  { %s587_s15 = scalar_lea.hbm %s768_s3, 256 }
 0x16d   :  { %p588_p7 = scmp.ne.s32.totalorder %s768_s3, %s587_s15  ;;  %p591_p8 = scmp.lt.u32.totalorder %s587_s15, %s768_s3 }
 0x16f   :  { %p593_p9 = pnand %p591_p8, %p588_p7 }
 0x171   :  { %596 = shalt.err (!%p593_p9)
}
 0x172   :  { %442 = dma.vmem_to_hbm [thread:$0]  %s437_s11, 256, %s768_s3, [#allocation4], %s604_s22, %s604_s22, %s605_s23  }
 0x173   :  { %601 = dma.done.wait [#allocation4], 256  }
 0x174   :  { %602 = vsyncadd [#allocation4], 4294967040 }
 0x175   :  { %446 = vsyncpa [#allocation3], 1 }
 0x176   :  { %447 = vsyncpa [#allocation6], 1 }
 0x177   :  { %448 = vsyncpa [#allocation4], 1 }

// kernel: tpu_custom_call.1
= control target key start
LH: loop header
LB: loop body
LE: loop exit
PB: predicated region body
PF: predicated region fallthrough
CT: control target
= control target key end

     0   :  { %8 = vsyncpa [#allocation3], 0  ;;  %s765_s0 = inlined_call_operand.hbm [shape: f32[16,128], index: 0, kind: input, shape index: {}]   ;;  %s766_s1 = inlined_call_operand.vmem [shape: f32[1,128], index: 1, kind: input, shape index: {}]   ;;  %s767_s2 = inlined_call_operand.hbm [shape: bf16[128,256], index: 2, kind: input, shape index: {}]   ;;  %s768_s3 = inlined_call_operand.hbm [shape: bf16[16,256], index: 3, kind: output, shape index: {}]  }
   0x1   :  { %9 = vsyncpa [#allocation6], 0 }
   0x2   :  { %10 = vsyncpa [#allocation4], 0  ;;  %s603_s12 = smov [#allocation2]   ;;  %s531_s16 = scalar_lea.hbm %s765_s0, 256 }
   0x3   :  { %s16_s13 = sshll.u32 %s603_s12, 4  ;;  %p532_p0 = scmp.ne.s32.totalorder %s765_s0, %s531_s16  ;;  %s17_s13 = int_to_ptr.vmem [resolvable:$true] %s16_s13 }
   0x4   :  { %p535_p1 = scmp.lt.u32.totalorder %s531_s16, %s765_s0 }
   0x6   :  { %p537_p2 = pnand %p535_p1, %p532_p0 }
   0x8   :  { %540 = shalt.err (!%p537_p2)
}
   0x9   :  { %s541_s21 = scalar_lea.vmem %s17_s13, 256  ;;  %p546_p4 = scmp.lt.s32.totalorder %s17_s13, %s17_s13 }
   0xa   :  { %p542_p3 = scmp.ne.s32.totalorder %s17_s13, %s541_s21  ;;  %p547_p5 = scmp.lt.s32.totalorder %s541_s21, %s541_s21 }
   0xc   :  { %p548_p6 = por %p547_p5, %p546_p4 }
   0xe   :  { %p549_p7 = pnand %p548_p6, %p542_p3 }
  0x10   :  { %552 = shalt.err (!%p549_p7)
}
  0x11   :  { %s604_s22 = smov 128   ;;  %s605_s23 = smov 8  }
  0x12   :  { %22 = dma.hbm_to_vmem [thread:$0]  %s765_s0, 256, %s17_s13, [#allocation3], %s604_s22, %s604_s22, %s605_s23  }
  0x13   :  { %s606_s26 = smov [#allocation5]   ;;  %s553_s30 = scalar_lea.hbm %s767_s2, 2048 }
  0x14   :  { %s30_s27 = sshll.u32 %s606_s26, 4  ;;  %p554_p8 = scmp.ne.s32.totalorder %s767_s2, %s553_s30  ;;  %s31_s27 = int_to_ptr.vmem [resolvable:$true] %s30_s27 }
  0x15   :  { %p557_p9 = scmp.lt.u32.totalorder %s553_s30, %s767_s2 }
  0x17   :  { %p559_p10 = pnand %p557_p9, %p554_p8 }
  0x19   :  { %562 = shalt.err (!%p559_p10)
}
  0x1a   :  { %s563_s8 = scalar_lea.vmem %s31_s27, 2048  ;;  %p568_p12 = scmp.lt.s32.totalorder %s31_s27, %s31_s27 }
  0x1b   :  { %p564_p11 = scmp.ne.s32.totalorder %s31_s27, %s563_s8  ;;  %p569_p13 = scmp.lt.s32.totalorder %s563_s8, %s563_s8 }
  0x1d   :  { %p570_p0 = por %p569_p13, %p568_p12 }
  0x1f   :  { %p571_p1 = pnand %p570_p0, %p564_p11 }
  0x21   :  { %574 = shalt.err (!%p571_p1)
}
  0x22   :  { %36 = dma.hbm_to_vmem [thread:$0]  %s767_s2, 2048, %s31_s27, [#allocation6], %s604_s22, %s604_s22, %s605_s23  }
  0x23   :  { %597 = dma.done.wait [#allocation3], 256  }
  0x24   :  { %598 = vsyncadd [#allocation3], 4294967040 }
  0x25   :  { %599 = dma.done.wait [#allocation6], 2048  }
  0x26   :  { %600 = vsyncadd [#allocation6], 4294965248  ;;  %v607_v0 = vmov 0   ;;  %v497_v1 = vld [vmem:[#allocation5 + $0x4] ss:$8 sps:$4 sm:$0xff]   ;;  %v50_v2 = vlaneseq  ;;  %v665_v12 = vld [vmem:[#allocation2] sm:$0xff] }
  0x27   :  { %406 = vmatprep.mubr.bf16.mxu0 %v607_v0  ;;  %v499_v3 = vld [vmem:[#allocation5] ss:$8 sps:$4 sm:$0xff]   ;;  %374 = vmatprep.subr.bf16.mxu0 %v497_v1  ;;  %v500_v4 = vld [vmem:[#allocation5 + $0x14] ss:$8 sps:$4 sm:$0xff]   ;;  %v502_v5 = vld [vmem:[#allocation5 + $0x10] ss:$8 sps:$4 sm:$0xff]  }
  0x28   :  { %375 = vmatpush1.bf16.msra.mxu0 %v499_v3  ;;  %v503_v6 = vld [vmem:[#allocation5 + $0x24] ss:$8 sps:$4 sm:$0xff]   ;;  %v51_v7 = vshrl.u32 %v50_v2, 7  ;;  %v505_v8 = vld [vmem:[#allocation5 + $0x20] ss:$8 sps:$4 sm:$0xff]   ;;  %v667_v13 = vld [vmem:[#allocation2 + $0x8] sm:$0xff] }
  0x29   :  { %376 = vmatprep.subr.bf16.mxu0 %v500_v4  ;;  %v506_v9 = vld [vmem:[#allocation5 + $0x34] ss:$8 sps:$4 sm:$0xff]   ;;  %v508_v11 = vld [vmem:[#allocation5 + $0x30] ss:$8 sps:$4 sm:$0xff]   ;;  %v509_v15 = vld [vmem:[#allocation5 + $0x44] ss:$8 sps:$4 sm:$0xff]  }
  0x2a   :  { %v52_v10 = vsub.s32 0, %v51_v7  ;;  %v46_v14 = vld [vmem:[%s766_s1] sm:$0x1]  ;;  %v511_v20 = vld [vmem:[#allocation5 + $0x40] ss:$8 sps:$4 sm:$0xff]   ;;  %s614_s1 = smov [#allocation7]  }
  0x2b   :  { %v47_v16 = vadd.f32 1e-09, %v46_v14  ;;  %v512_v21 = vld [vmem:[#allocation5 + $0x54] ss:$8 sps:$4 sm:$0xff]   ;;  %v514_v26 = vld [vmem:[#allocation5 + $0x50] ss:$8 sps:$4 sm:$0xff]  }
  0x2c   :  { %377 = vmatpush1.bf16.msra.mxu0 %v502_v5  ;;  %v53_v17 = vrot.slane %v46_v14, %v52_v10  ;;  %v515_v31 = vld [vmem:[#allocation5 + $0x64] ss:$8 sps:$4 sm:$0xff]   ;;  %v517_v35 = vld [vmem:[#allocation5 + $0x60] ss:$8 sps:$4 sm:$0xff]   ;;  %v518_v40 = vld [vmem:[#allocation5 + $0x74] ss:$8 sps:$4 sm:$0xff]  }
  0x2d   :  { %378 = vmatprep.subr.bf16.mxu0 %v503_v6  ;;  %521 = vrcp.f32 %v47_v16  ;;  %v520_v46 = vld [vmem:[#allocation5 + $0x70] ss:$8 sps:$4 sm:$0xff]   ;;  %v608_v51 = vmov 683565275   ;;  %v609_v53 = vmov 2475754826  }
  0x2e   :  { %v673_v18 = vmul.f32 %v53_v17, %v665_v12  ;;  %v676_v19 = vmul.f32 %v53_v17, %v667_v13  ;;  %v610_v55 = vmov 2131351028   ;;  %v611_v57 = vmov 2102212464   ;;  %s436_s11 = sshll.u32 %s614_s1, 4  ;;  %s437_s11 = int_to_ptr.vmem [resolvable:$true] %s436_s11 }
  0x2f   :  { %v612_v59 = vmov 920167782   ;;  %v613_v3 = vmov 1326507024   ;;  %s575_s12 = scalar_lea.vmem %s437_s11, 256  ;;  %p580_p3 = scmp.lt.s32.totalorder %s437_s11, %s437_s11 }
  0x30   :  { %379 = vmatpush1.bf16.msra.mxu0 %v505_v8  ;;  %v57_v22 = vand.u32 2147483647, %v673_v18  ;;  %v60_v23 = vand.u32 2139095040, %v673_v18  ;;  %v161_v24 = vand.u32 2147483647, %v676_v19  ;;  %v164_v25 = vand.u32 2139095040, %v676_v19  ;;  %p576_p2 = scmp.ne.s32.totalorder %s437_s11, %s575_s12  ;;  %p581_p4 = scmp.lt.s32.totalorder %s575_s12, %s575_s12 }
  0x31   :  { %380 = vmatprep.subr.bf16.mxu0 %v506_v9  ;;  %vm59_vm14 = vcmp.lt.s32.totalorder %v673_v18, 0 }
  0x32   :  { %v61_v27 = vshrl.u32 %v60_v23, 23  ;;  %v64_v28 = vand.u32 8388607, %v57_v22  ;;  %v165_v29 = vshrl.u32 %v164_v25, 23  ;;  %v168_v30 = vand.u32 8388607, %v161_v24  ;;  %p582_p5 = por %p581_p4, %p580_p3 }
  0x33   :  { %vm58_vm15 = vcmp.le.f32.partialorder %v57_v22, 0.7853982 }
  0x34   :  { %381 = vmatpush1.bf16.msra.mxu0 %v508_v11  ;;  %v449_v32 = vadd.s32 4294967169, %v61_v27  ;;  %v453_v33 = vadd.s32 4294967169, %v165_v29  ;;  %v65_v36 = vor.u32 8388608, %v64_v28  ;;  %v169_v37 = vor.u32 8388608, %v168_v30  ;;  %p583_p6 = pnand %p582_p5, %p576_p2 }
  0x35   :  { %382 = vmatprep.subr.bf16.mxu0 %v509_v15 }
  0x36   :  { %v67_v34 = vadd.s32 1, %v449_v32  ;;  %v171_v38 = vadd.s32 1, %v453_v33  ;;  %v688_v47 = vshll.u32 %v65_v36, 8  ;;  %v690_v49 = vshll.u32 %v169_v37, 8 }
  0x37   :  { %v522_v39 = vpop.eup %521 }
  0x38   :  { %383 = vmatpush1.bf16.msra.mxu0 %v511_v20  ;;  %vm68_vm0 = vcmp.gt.s32.totalorder %v67_v34, 0  ;;  %vm172_vm1 = vcmp.gt.s32.totalorder %v171_v38, 0  ;;  %v686_v42 = vrot.slane %v522_v39, %v52_v10 }
  0x39   :  { %384 = vmatprep.subr.bf16.mxu0 %v512_v21  ;;  %v69_v41 = vsel %vm68_vm0, %v67_v34, 0  ;;  %v173_v45 = vsel %vm172_vm1, %v171_v38, 0  ;;  %vm163_vm0 = vcmp.lt.s32.totalorder %v676_v19, 0  ;;  %vm162_vm1 = vcmp.le.f32.partialorder %v161_v24, 0.7853982 }
  0x3a   :  { %v70_v43 = vshrl.u32 %v69_v41, 5  ;;  %v71_v44 = vand.u32 31, %v69_v41  ;;  %v175_v48 = vand.u32 31, %v173_v45  ;;  %v692_v61 = vshrl.u32 %v173_v45, 5 }
  0x3c   :  { %385 = vmatpush1.bf16.msra.mxu0 %v514_v26  ;;  %v72_v50 = vsub.s32 32, %v71_v44  ;;  %v74_v52 = vshll.u32 %v608_v51, %v71_v44  ;;  %v77_v54 = vshll.u32 %v609_v53, %v71_v44  ;;  %v80_v56 = vshll.u32 %v610_v55, %v71_v44 }
  0x3d   :  { %386 = vmatprep.subr.bf16.mxu0 %v515_v31  ;;  %v83_v58 = vshll.u32 %v611_v57, %v71_v44  ;;  %v86_v60 = vshll.u32 %v612_v59, %v71_v44  ;;  %vm89_vm2 = vcmp.lt.s32.totalorder %v70_v43, 1  ;;  %vm90_vm3 = vcmp.lt.s32.totalorder %v70_v43, 2 }
  0x3e   :  { %v73_v62 = vshrl.u32 %v608_v51, %v72_v50  ;;  %v75_v63 = vshrl.u32 %v609_v53, %v72_v50  ;;  %v78_v0 = vshrl.u32 %v610_v55, %v72_v50  ;;  %v81_v1 = vshrl.u32 %v611_v57, %v72_v50 }
  0x3f   :  { %v84_v2 = vshrl.u32 %v612_v59, %v72_v50  ;;  %v87_v4 = vshrl.u32 %v613_v3, %v72_v50  ;;  %vm92_vm4 = vcmp.lt.s32.totalorder %v70_v43, 4  ;;  %v176_v8 = vsub.s32 32, %v175_v48 }
  0x40   :  { %387 = vmatpush1.bf16.msra.mxu0 %v517_v35  ;;  %v76_v5 = vor.u32 %v75_v63, %v74_v52  ;;  %v79_v6 = vor.u32 %v78_v0, %v77_v54  ;;  %v82_v7 = vor.u32 %v81_v1, %v80_v56  ;;  %vm91_vm5 = vcmp.lt.s32.totalorder %v70_v43, 3 }
  0x41   :  { %388 = vmatprep.subr.bf16.mxu0 %v518_v40  ;;  %v85_v9 = vor.u32 %v84_v2, %v83_v58  ;;  %v88_v10 = vor.u32 %v87_v4, %v86_v60  ;;  %v178_v11 = vshll.u32 %v608_v51, %v175_v48  ;;  %v181_v25 = vshll.u32 %v609_v53, %v175_v48 }
  0x42   :  { %v93_v14 = vsel %vm89_vm2, %v73_v62, %v76_v5  ;;  %v94_v15 = vsel %vm92_vm4, %v82_v7, 2102212464  ;;  %v97_v16 = vsel %vm89_vm2, %v76_v5, %v79_v6  ;;  %v101_v17 = vsel %vm89_vm2, %v79_v6, %v82_v7 }
  0x43   :  { %v95_v20 = vsel %vm91_vm5, %v79_v6, %v94_v15  ;;  %v98_v21 = vsel %vm92_vm4, %v85_v9, 920167782  ;;  %v102_v23 = vsel %vm92_vm4, %v88_v10, 1326507024  ;;  %v177_v28 = vshrl.u32 %v608_v51, %v176_v8 }
  0x44   :  { %389 = vmatpush1.bf16.msra.mxu0 %v520_v46  ;;  %v99_v26 = vsel %vm91_vm5, %v82_v7, %v98_v21  ;;  %v103_v27 = vsel %vm91_vm5, %v85_v9, %v102_v23  ;;  %v179_v29 = vshrl.u32 %v609_v53, %v176_v8  ;;  %v96_v30 = vsel %vm90_vm3, %v93_v14, %v95_v20 }
  0x45   :  { %v100_v31 = vsel %vm90_vm3, %v97_v16, %v99_v26  ;;  %v104_v32 = vsel %vm90_vm3, %v101_v17, %v103_v27  ;;  %v182_v33 = vshrl.u32 %v610_v55, %v176_v8  ;;  %v184_v40 = vshll.u32 %v610_v55, %v175_v48 }
  0x46   :  { %v701_v34 = vmul.u32.u64.low %v688_v47, %v104_v32  ;;  %v702_v35 = vmul.u32.u64.high %v688_v47, %v104_v32, %v701_v34  ;;  %v705_v36 = vmul.u32.u64.low %v688_v47, %v100_v31  ;;  %v706_v37 = vmul.u32.u64.high %v688_v47, %v100_v31, %v705_v36 }
  0x47   :  { %v180_v38 = vor.u32 %v179_v29, %v178_v11  ;;  %v183_v39 = vor.u32 %v182_v33, %v181_v25  ;;  %v185_v41 = vshrl.u32 %v611_v57, %v176_v8  ;;  %v187_v44 = vshll.u32 %v611_v57, %v175_v48 }
  0x48   :  { %v188_v45 = vshrl.u32 %v612_v59, %v176_v8  ;;  %v190_v46 = vshll.u32 %v612_v59, %v175_v48  ;;  %v191_v50 = vshrl.u32 %v613_v3, %v176_v8  ;;  %v112_v43 = vmul.u32 %v688_v47, %v96_v30 }
  0x49   :  { %v186_v51 = vor.u32 %v185_v41, %v184_v40  ;;  %vm193_vm6 = vcmp.lt.s32.totalorder %v692_v61, 1  ;;  %vm194_vm7 = vcmp.lt.s32.totalorder %v692_v61, 2  ;;  %vm114_vm8 = vc.u32 %v702_v35, %v705_v36 }
  0x4a   :  { %v115_v52 = vadd.s32 1, %v706_v37  ;;  %v189_v53 = vor.u32 %v188_v45, %v187_v44  ;;  %vm195_vm9 = vcmp.lt.s32.totalorder %v692_v61, 3  ;;  %v192_v54 = vor.u32 %v191_v50, %v190_v46 }
  0x4b   :  { %vm196_vm10 = vcmp.lt.s32.totalorder %v692_v61, 4  ;;  %v197_v55 = vsel %vm193_vm6, %v177_v28, %v180_v38  ;;  %v201_v48 = vsel %vm193_vm6, %v180_v38, %v183_v39  ;;  %v205_v58 = vsel %vm193_vm6, %v183_v39, %v186_v51 }
  0x4c   :  { %v116_v56 = vsel %vm114_vm8, %v115_v52, %v706_v37  ;;  %v198_v47 = vsel %vm196_vm10, %v186_v51, 2102212464  ;;  %v202_v57 = vsel %vm196_vm10, %v189_v53, 920167782  ;;  %v206_v63 = vsel %vm196_vm10, %v192_v54, 1326507024 }
  0x4d   :  { %v117_v59 = vadd.s32 %v116_v56, %v112_v43  ;;  %v199_v60 = vsel %vm195_vm9, %v183_v39, %v198_v47  ;;  %v203_v62 = vsel %vm195_vm9, %v186_v51, %v202_v57  ;;  %v207_v2 = vsel %vm195_vm9, %v189_v53, %v206_v63 }
  0x4e   :  { %v200_v0 = vsel %vm194_vm7, %v197_v55, %v199_v60  ;;  %v204_v1 = vsel %vm194_vm7, %v201_v48, %v203_v62  ;;  %v208_v4 = vsel %vm194_vm7, %v205_v58, %v207_v2  ;;  %v113_v29 = vadd.s32 %v705_v36, %v702_v35 }
  0x4f   :  { %v118_v3 = vadd.s32 536870912, %v117_v59  ;;  %v723_v5 = vmul.u32.u64.low %v690_v49, %v204_v1  ;;  %v724_v6 = vmul.u32.u64.high %v690_v49, %v204_v1, %v723_v5  ;;  %v216_v10 = vmul.u32 %v690_v49, %v200_v0 }
  0x50   :  { %v727_v7 = vmul.u32.u64.low %v690_v49, %v208_v4  ;;  %v728_v8 = vmul.u32.u64.high %v690_v49, %v208_v4, %v727_v7  ;;  %vm149_vm5 = vweird.f32 %v673_v18  ;;  %vm253_vm9 = vweird.f32 %v676_v19 }
  0x51   :  { %v119_v9 = vshrl.u32 %v118_v3, 30  ;;  %v219_v14 = vadd.s32 1, %v724_v6 }
  0x52   :  { %vm218_vm11 = vc.u32 %v728_v8, %v723_v5  ;;  %v217_v50 = vadd.s32 %v723_v5, %v728_v8 }
  0x53   :  { %v120_v11 = vshll.u32 %v119_v9, 30  ;;  %v220_v61 = vsel %vm218_vm11, %v219_v14, %v724_v6  ;;  %v143_v35 = vsub.s32 4, %v119_v9 }
  0x54   :  { %v221_v16 = vadd.s32 %v220_v61, %v216_v10 }
  0x55   :  { %v121_v15 = vsub.s32 %v117_v59, %v120_v11  ;;  %v144_v47 = vsel %vm59_vm14, %v143_v35, %v119_v9 }
  0x56   :  { %v222_v20 = vadd.s32 536870912, %v221_v16  ;;  %v146_v62 = vsel %vm58_vm15, 0, %v144_v47 }
  0x57   :  { %v123_v17 = vsub.s32 0, %v121_v15  ;;  %v150_v3 = vadd.s32 3, %v146_v62 }
  0x58   :  { %v223_v23 = vshrl.u32 %v222_v20, 30 }
  0x59   :  { %v450_v21 = vmin.u32 %v123_v17, %v121_v15  ;;  %v151_v6 = vand.u32 3, %v150_v3 }
  0x5a   :  { %v224_v26 = vshll.u32 %v223_v23, 30  ;;  %v247_v2 = vsub.s32 4, %v223_v23 }
  0x5b   :  { %v125_v25 = vclz %v450_v21  ;;  %vm156_vm2 = vcmp.eq.s32.totalorder %v151_v6, 2  ;;  %vm153_vm3 = vcmp.eq.s32.totalorder %v151_v6, 0  ;;  %vm152_vm4 = vcmp.lt.s32.totalorder %v151_v6, 2 }
  0x5c   :  { %v225_v28 = vsub.s32 %v221_v16, %v224_v26  ;;  %v248_v5 = vsel %vm163_vm0, %v247_v2, %v223_v23 }
  0x5d   :  { %v451_v27 = vadd.s32 4294967294, %v125_v25  ;;  %v250_v9 = vsel %vm162_vm1, 0, %v248_v5 }
  0x5e   :  { %v227_v30 = vsub.s32 0, %v225_v28 }
  0x5f   :  { %vm452_vm12 = vcmp.lt.s32.totalorder %v451_v27, 0 }
  0x60   :  { %v128_v49 = vsel %vm452_vm12, 0, %v451_v27  ;;  %v454_v34 = vmin.u32 %v227_v30, %v225_v28 }
  0x61   :  { %v129_v31 = vsub.s32 32, %v128_v49  ;;  %v130_v32 = vshll.u32 %v121_v15, %v128_v49  ;;  %v133_v33 = vsub.s32 4294967266, %v128_v49  ;;  %v254_v15 = vadd.s32 3, %v250_v9 }
  0x62   :  { %v229_v39 = vclz %v454_v34 }
  0x63   :  { %v131_v37 = vshrl.u32 %v113_v29, %v129_v31  ;;  %v134_v38 = vadd.s32 127, %v133_v33  ;;  %v255_v20 = vand.u32 3, %v254_v15 }
  0x64   :  { %v455_v44 = vadd.s32 4294967294, %v229_v39 }
  0x65   :  { %v132_v40 = vor.u32 %v131_v37, %v130_v32  ;;  %v135_v41 = vshll.u32 %v134_v38, 23  ;;  %vm260_vm6 = vcmp.eq.s32.totalorder %v255_v20, 2  ;;  %vm257_vm7 = vcmp.eq.s32.totalorder %v255_v20, 0 }
  0x66   :  { %vm456_vm13 = vcmp.lt.s32.totalorder %v455_v44, 0  ;;  %vm256_vm8 = vcmp.lt.s32.totalorder %v255_v20, 2 }
  0x67   :  { %v136_v45 = vor.u32 4788187, %v135_v41  ;;  %v139_v46 = vcvt.s32.f32 %v132_v40  ;;  %v232_v36 = vsel %vm456_vm13, 0, %v455_v44 }
  0x68   :  { %v233_v51 = vsub.s32 32, %v232_v36  ;;  %v234_v52 = vshll.u32 %v225_v28, %v232_v36  ;;  %v237_v53 = vsub.s32 4294967266, %v232_v36 }
  0x69   :  { %v137_v43 = vand.u32 2147483647, %v136_v45 }
  0x6a   :  { %v235_v55 = vshrl.u32 %v217_v50, %v233_v51  ;;  %v238_v48 = vadd.s32 127, %v237_v53 }
  0x6b   :  { %v140_v54 = vmul.f32 %v139_v46, %v137_v43 }
  0x6c   :  { %v236_v57 = vor.u32 %v235_v55, %v234_v52  ;;  %v239_v58 = vshll.u32 %v238_v48, 23 }
  0x6d   :  { %v141_v56 = vxor.u32 2147483648, %v140_v54 }
  0x6e   :  { %v240_v63 = vor.u32 4788187, %v239_v58  ;;  %v243_v0 = vcvt.s32.f32 %v236_v57 }
  0x6f   :  { %v142_v59 = vsel %vm59_vm14, %v141_v56, %v140_v54 }
  0x70   :  { %v145_v60 = vsel %vm58_vm15, %v673_v18, %v142_v59  ;;  %v241_v1 = vand.u32 2147483647, %v240_v63 }
  0x71   :  { %523 = vcosq.f32 %v145_v60 }
  0x72   :  { %525 = vsinq.f32 %v145_v60  ;;  %v244_v4 = vmul.f32 %v243_v0, %v241_v1 }
  0x74   :  { %v245_v22 = vxor.u32 2147483648, %v244_v4 }
  0x76   :  { %v246_v7 = vsel %vm163_vm0, %v245_v22, %v244_v4 }
  0x77   :  { %v249_v8 = vsel %vm162_vm1, %v676_v19, %v246_v7 }
  0x78   :  { %527 = vcosq.f32 %v249_v8 }
  0x79   :  { %529 = vsinq.f32 %v249_v8 }
  0x7b   :  { %v524_v10 = vpop.eup %523 }
  0x7c   :  { %v526_v11 = vpop.eup %525  ;;  %v157_v14 = vxor.u32 2147483648, %v524_v10 }
  0x7d   :  { %v154_v61 = vxor.u32 2147483648, %v526_v11 }
  0x7e   :  { %v158_v24 = vsel %vm156_vm2, %v157_v14, %v526_v11 }
  0x7f   :  { %v155_v16 = vsel %vm153_vm3, %v524_v10, %v154_v61 }
  0x80   :  { %v159_v17 = vsel %vm152_vm4, %v155_v16, %v158_v24 }
  0x81   :  { %v160_v21 = vsel %vm149_vm5, nan, %v159_v17 }
  0x82   :  { %v265_v23 = vmul.f32 %v160_v21, %v160_v21  ;;  %v528_v25 = vpop.eup %527 }
  0x83   :  { %v530_v27 = vpop.eup %529  ;;  %v261_v28 = vxor.u32 2147483648, %v528_v25 }
  0x84   :  { %v273_v26 = vmul.f32 %v686_v42, %v265_v23  ;;  %v258_v29 = vxor.u32 2147483648, %v530_v27 }
  0x85   :  { %v262_v49 = vsel %vm260_vm6, %v261_v28, %v530_v27 }
  0x86   :  { %v259_v30 = vsel %vm257_vm7, %v528_v25, %v258_v29  ;;  %v275_v34 = vadd.f32 %v273_v26, %v665_v12 }
  0x87   :  { %v263_v18 = vsel %vm256_vm8, %v259_v30, %v262_v49 }
  0x88   :  { %v264_v31 = vsel %vm253_vm9, nan, %v263_v18 }
  0x89   :  { %v266_v32 = vmul.f32 %v264_v31, %v264_v31 }
  0x8b   :  { %v274_v33 = vmul.f32 %v686_v42, %v266_v32 }
  0x8d   :  { %v276_v37 = vadd.f32 %v274_v33, %v667_v13 }
  0x8f   :  { %v277_v38 = vpack.c.bf16 %v276_v37, %v275_v34 }
  0x91   :  { %407 = vmatmul.mubr.bf16.vlgmr.msra.gmra.mrb[0].mxu0 %v277_v38 }
 0x164   :  { %v408_v39 = vpop.f32.mrb[0].mxu0 }
 0x165   :  { %v410_v40 = vpop.f32.mrb[1].mxu0 }
 0x166   :  { %v475_v41 = vpack.c.bf16 %v410_v40, %v408_v39  ;;  %v412_v44 = vpop.f32.mrb[2].mxu0 }
 0x167   :  { %v414_v19 = vpop.f32.mrb[3].mxu0 }
 0x168   :  { %429 = vst [vmem:[#allocation7] sm:$0xff] %v475_v41  ;;  %v476_v45 = vpack.c.bf16 %v414_v19, %v412_v44 }
 0x16a   :  { %430 = vst [vmem:[#allocation7 + $0x8] sm:$0xff] %v476_v45 }
 0x16b   :  { %586 = shalt.err (!%p583_p6)
}
 0x16c   :  { %s587_s15 = scalar_lea.hbm %s768_s3, 256 }
 0x16d   :  { %p588_p7 = scmp.ne.s32.totalorder %s768_s3, %s587_s15  ;;  %p591_p8 = scmp.lt.u32.totalorder %s587_s15, %s768_s3 }
 0x16f   :  { %p593_p9 = pnand %p591_p8, %p588_p7 }
 0x171   :  { %596 = shalt.err (!%p593_p9)
}
 0x172   :  { %442 = dma.vmem_to_hbm [thread:$0]  %s437_s11, 256, %s768_s3, [#allocation4], %s604_s22, %s604_s22, %s605_s23  }
 0x173   :  { %601 = dma.done.wait [#allocation4], 256  }
 0x174   :  { %602 = vsyncadd [#allocation4], 4294967040 }
 0x175   :  { %446 = vsyncpa [#allocation3], 1 }
 0x176   :  { %447 = vsyncpa [#allocation6], 1 }
 0x177   :  { %448 = vsyncpa [#allocation4], 1 }

</bundles_post_ra>
